<compile_context>
chip_gen: v6e
topology: v6e:2x2x1
jax: 0.10.0
libtpu: 0.0.40
codegen_flags: <defaults>
</compile_context>

<pallas_src>
import functools

import jax
import jax.numpy as jnp
from jax import lax
from jax.experimental import pallas as pl
from jax.experimental.pallas import tpu as pltpu


def _cdiv(a, b):
    return (a + b - 1) // b


def _round_up(a, b):
    return _cdiv(a, b) * b


def _vmem_capacity_bytes():
    """Per-core VMEM capacity; conservative v7x fallback if the query fails."""
    try:
        info = pltpu.get_tpu_info()
        cap = getattr(info, "vmem_capacity_bytes", None)
        if cap:
            return int(cap)
    except Exception:
        pass
    return 64 << 20


def _pick_chunk_rows(n_rows, n_classes, itemsize):
    """Pick the spatial chunk size (in 128-pixel rows).

    Sized so that double-buffered input tiles + resident accumulators + ~3
    full-tile f32 temporaries fit in ~70% of this generation's VMEM, capped at
    a ~16 MiB DMA tile (per-step overhead is already <2% there).  Chunks are
    then balanced across the spatial extent to minimize padding, and never
    exceed the VMEM-derived maximum (fixes the old full-extent fallback)."""
    cap = _vmem_capacity_bytes()
    usable = int(cap * 0.70)
    # Per 128-pixel row: 2x (logits + labels) for double buffering, plus ~3
    # full-tile f32 temporaries (f32 upcast, softmax, select intermediates).
    per_row = 2 * (n_classes * 128 * itemsize + 128 * 4) + 3 * n_classes * 128 * 4
    fixed = 4 * n_classes * 8 * 128 * 4 + (2 << 20)     # accumulators + headroom
    max_rows = max(8, (usable - fixed) // per_row)
    cap_rows = max(8, (16 << 20) // (n_classes * 128 * itemsize))
    max_rows = int(min(max_rows, cap_rows))
    max_rows = max(8, (max_rows // 8) * 8)
    if n_rows <= max_rows:
        return _round_up(n_rows, 8)
    n_chunks = _cdiv(n_rows, max_rows)
    return _round_up(_cdiv(n_rows, n_chunks), 8)        # <= max_rows by construction


def _soft_iou_kernel(x_ref, t_ref, inter_ref, union_ref, *, n_classes, has_pad):
    """One (batch, spatial-half, spatial-chunk) grid step.

    x_ref:     (1, C, rows, 128) logits tile (input dtype, upcast to f32 here)
    t_ref:     (1, 1, rows, 128) int32 class labels (padded pixels carry C)
    inter_ref: (1, 1, C, 8, 128) f32 per-class lane-dense partial intersections
    union_ref: (1, 1, C, 8, 128) f32 per-class lane-dense partial unions
    Outputs accumulate across the spatial-chunk grid axis (axis 2).
    """
    s = pl.program_id(2)

    @pl.when(s == 0)
    def _():
        inter_ref[...] = jnp.zeros_like(inter_ref)
        union_ref[...] = jnp.zeros_like(union_ref)

    x = x_ref[0].astype(jnp.float32)            # (C, rows, 128)
    t = t_ref[0]                                # (1, rows, 128) int32

    # Softmax over the leading class axis: C-way elementwise VPU ops, no
    # cross-sublane/lane reduction.
    m = jnp.max(x, axis=0, keepdims=True)       # (1, rows, 128)
    e = jnp.exp(x - m)                          # (C, rows, 128)
    den = jnp.sum(e, axis=0, keepdims=True)     # (1, rows, 128)
    # One reciprocal per pixel instead of a per-class broadcast divide.
    # approx=True (EUP vrcp) is a free further saving if the tolerance allows.
    p = e * pl.reciprocal(den, approx=False)    # (C, rows, 128)

    if has_pad:
        # Padded pixels carry the sentinel label n_classes; zero their
        # probability mass so they contribute nothing to inter/union.
        p = p * (t < n_classes).astype(jnp.float32)

    # Tiny class-index iota; the == broadcasts over (rows, 128) without
    # materializing a full (C, rows, 128) int32 tensor.
    cls = lax.broadcasted_iota(jnp.int32, (n_classes, 1, 128), 0)
    mask = cls == t                             # (C, rows, 128) bool

    # inter = pred * onehot ; union = pred + onehot - pred * onehot
    inter_elem = jnp.where(mask, p, 0.0)
    union_elem = jnp.where(mask, 1.0, p)

    # Reduce only across rows/8 vreg groups (pure VPU adds, no cross-sublane
    # XLU collapse); accumulate into an unmasked, lane-dense (C, 8, 128) block.
    rows = x.shape[1]
    groups = rows // 8
    inter_g = inter_elem.reshape(n_classes, groups, 8, 128).sum(axis=1)
    union_g = union_elem.reshape(n_classes, groups, 8, 128).sum(axis=1)
    inter_ref[0, 0] += inter_g
    union_ref[0, 0] += union_g


def soft_iou_loss(logits, target, *, chunk_rows=None):
    """Pallas implementation of SoftIoULoss.forward.

    logits: (N, C, H, W) float32 / bfloat16 logits
    target: (N, H, W) integer class indices in [0, C)
    returns scalar float32 loss = -mean_{n,c}( inter / (union + 1e-16) )
    """
    N, C, H, W = logits.shape
    HW = H * W
    R0 = _cdiv(HW, 128)                         # spatial rows of 128 pixels

    x_itemsize = jnp.dtype(logits.dtype).itemsize
    rb = chunk_rows if chunk_rows is not None else _pick_chunk_rows(R0, C, x_itemsize)
    rb = max(8, _round_up(rb, 8))
    num_chunks = _cdiv(R0, rb)
    R = num_chunks * rb
    HW_pad = R * 128
    has_pad = HW_pad != HW

    # Layout: lanes carry 128 spatial pixels, sublanes carry spatial rows, the
    # (small) class axis is a leading dim.  Keep the input dtype (bf16 OK),
    # upcast inside the kernel.
    x = logits.reshape(N, C, HW)
    # TODO(synk): pass labels as int8 (C < 128) to cut label HBM traffic 4x.
    t = target.reshape(N, HW).astype(jnp.int32)
    if has_pad:
        x = jnp.pad(x, ((0, 0), (0, 0), (0, HW_pad - HW)))
        t = jnp.pad(t, ((0, 0), (0, HW_pad - HW)), constant_values=C)
    x = x.reshape(N, C, R, 128)
    t = t.reshape(N, 1, R, 128)

    # Dual-TensorCore coverage on v7x even when N == 1: split the spatial
    # chunk axis with a small leading 'parallel' axis when it divides evenly.
    P = 2 if (num_chunks >= 2 and num_chunks % 2 == 0) else 1
    cpp = num_chunks // P

    # Honest VMEM budget: double-buffered input tiles + resident accumulators
    # + ~3 full-tile f32 temporaries + fixed headroom, clamped to capacity.
    f32_tile = C * rb * 128 * 4
    x_tile = C * rb * 128 * x_itemsize
    t_tile = rb * 128 * 4
    out_blocks = 2 * C * 8 * 128 * 4
    vmem_budget = 2 * (x_tile + t_tile) + 2 * out_blocks + 3 * f32_tile + (2 << 20)
    cap = _vmem_capacity_bytes()
    vmem_limit = int(min(max(vmem_budget, 16 << 20), int(cap * 0.9)))

    kernel = functools.partial(_soft_iou_kernel, n_classes=C, has_pad=has_pad)

    inter, union = pl.pallas_call(
        kernel,
        out_shape=(
            jax.ShapeDtypeStruct((N, P, C, 8, 128), jnp.float32),
            jax.ShapeDtypeStruct((N, P, C, 8, 128), jnp.float32),
        ),
        grid_spec=pltpu.PrefetchScalarGridSpec(
            num_scalar_prefetch=0,
            grid=(N, P, cpp),
            in_specs=[
                pl.BlockSpec((1, C, rb, 128), lambda n, h, s: (n, 0, h * cpp + s, 0)),
                pl.BlockSpec((1, 1, rb, 128), lambda n, h, s: (n, 0, h * cpp + s, 0)),
            ],
            out_specs=(
                pl.BlockSpec((1, 1, C, 8, 128), lambda n, h, s: (n, h, 0, 0, 0)),
                pl.BlockSpec((1, 1, C, 8, 128), lambda n, h, s: (n, h, 0, 0, 0)),
            ),
        ),
        compiler_params=pltpu.CompilerParams(
            # Batch + spatial-half axes parallel (dual-TC on v7x); the
            # spatial-chunk axis is the reduction axis -> arbitrary.
            dimension_semantics=("parallel", "parallel", "arbitrary"),
            vmem_limit_bytes=vmem_limit,
        ),
    )(x, t)

    # Tiny final reductions (halves, 8 sublanes, 128 lanes) + divide + mean.
    inter_nc = inter.sum(axis=(1, 3, 4))        # (N, C)
    union_nc = union.sum(axis=(1, 3, 4))        # (N, C)
    return -jnp.mean(inter_nc / (union_nc + 1e-16))


def _soft_iou_loss_ref(logits, target):
    """Pure-JAX reference mirroring the PyTorch module."""
    N, C, H, W = logits.shape
    pred = jax.nn.softmax(logits.astype(jnp.float32), axis=1)
    onehot = jax.nn.one_hot(target, C, axis=1, dtype=jnp.float32)  # (N,C,H,W)
    inter = (pred * onehot).reshape(N, C, -1).sum(axis=2)
    union = (pred + onehot - pred * onehot).reshape(N, C, -1).sum(axis=2)
    return -jnp.mean(inter / (union + 1e-16))


if __name__ == "__main__":
    # SoftIoULoss has no learnable parameters; n_classes is a constructor arg.
    N, C, H, W = 2, 4, 16, 16

    key = jax.random.PRNGKey(0)
    k_logits, k_target = jax.random.split(key)
    logits = jax.random.normal(k_logits, (N, C, H, W), dtype=jnp.float32)
    target = jax.random.randint(k_target, (N, H, W), 0, C, dtype=jnp.int32)

    loss = jax.block_until_ready(soft_iou_loss(logits, target))
    ref = jax.block_until_ready(_soft_iou_loss_ref(logits, target))

    assert jnp.allclose(loss, ref, atol=1e-5, rtol=1e-5), (loss, ref)
    print("KERNEL_OK")
</pallas_src>

<mosaic_0001>
module attributes {stable_mosaic.version = 11 : i64} {
  func.func @_soft_iou_kernel(%arg0: i32, %arg1: i32, %arg2: i32, %arg3: memref<1x4x8x128xf32, #tpu.memory_space<vmem>>, %arg4: memref<1x1x8x128xi32, #tpu.memory_space<vmem>>, %arg5: memref<1x1x4x8x128xf32, #tpu.memory_space<vmem>>, %arg6: memref<1x1x4x8x128xf32, #tpu.memory_space<vmem>>) attributes {dimension_semantics = [#tpu.dimension_semantics<parallel>, #tpu.dimension_semantics<parallel>, #tpu.dimension_semantics<arbitrary>], iteration_bounds = array<i64: 2, 1, 1>, scalar_prefetch = 0 : i64, scratch_operands = 0 : i64, tpu.core_type = #tpu.core_type<tc>, window_params = [{transform_indices = @transform_0, window_bounds = array<i64: 1, 4, 8, 128>}, {transform_indices = @transform_1, window_bounds = array<i64: 1, 1, 8, 128>}, {transform_indices = @transform_2, window_bounds = array<i64: 1, 1, 4, 8, 128>}, {transform_indices = @transform_3, window_bounds = array<i64: 1, 1, 4, 8, 128>}]} {
    %c0_i32 = arith.constant 0 : i32
    %0 = arith.cmpi eq, %arg2, %c0_i32 : i32
    %1 = arith.extui %0 : i1 to i32
    %c0_i32_0 = arith.constant 0 : i32
    %2 = arith.cmpi ne, %1, %c0_i32_0 : i32
    scf.if %2 {
      %cst_33 = arith.constant 0.000000e+00 : f32
      %47 = vector.broadcast %cst_33 : f32 to vector<1x1x4x8x128xf32>
      %c0_34 = arith.constant 0 : index
      %c0_35 = arith.constant 0 : index
      %c0_36 = arith.constant 0 : index
      %c0_37 = arith.constant 0 : index
      %c0_38 = arith.constant 0 : index
      %48 = vector.load %arg5[%c0_34, %c0_35, %c0_36, %c0_37, %c0_38] : memref<1x1x4x8x128xf32, #tpu.memory_space<vmem>>, vector<1x1x4x8x128xf32>
      tpu.vector_store %arg5[%c0_34, %c0_35, %c0_36, %c0_37, %c0_38], %47 {strides = array<i32>} : memref<1x1x4x8x128xf32, #tpu.memory_space<vmem>>, vector<1x1x4x8x128xf32>,
      %cst_39 = arith.constant 0.000000e+00 : f32
      %49 = vector.broadcast %cst_39 : f32 to vector<1x1x4x8x128xf32>
      %c0_40 = arith.constant 0 : index
      %c0_41 = arith.constant 0 : index
      %c0_42 = arith.constant 0 : index
      %c0_43 = arith.constant 0 : index
      %c0_44 = arith.constant 0 : index
      %50 = vector.load %arg6[%c0_40, %c0_41, %c0_42, %c0_43, %c0_44] : memref<1x1x4x8x128xf32, #tpu.memory_space<vmem>>, vector<1x1x4x8x128xf32>
      tpu.vector_store %arg6[%c0_40, %c0_41, %c0_42, %c0_43, %c0_44], %49 {strides = array<i32>} : memref<1x1x4x8x128xf32, #tpu.memory_space<vmem>>, vector<1x1x4x8x128xf32>,
    } else {
    }
    %c0 = arith.constant 0 : index
    %c0_1 = arith.constant 0 : index
    %c0_2 = arith.constant 0 : index
    %c0_3 = arith.constant 0 : index
    %3 = vector.load %arg3[%c0, %c0_1, %c0_2, %c0_3] : memref<1x4x8x128xf32, #tpu.memory_space<vmem>>, vector<1x4x8x128xf32>
    %4 = vector.shape_cast %3 : vector<1x4x8x128xf32> to vector<4x8x128xf32>
    %c0_4 = arith.constant 0 : index
    %c0_5 = arith.constant 0 : index
    %c0_6 = arith.constant 0 : index
    %c0_7 = arith.constant 0 : index
    %5 = vector.load %arg4[%c0_4, %c0_5, %c0_6, %c0_7] : memref<1x1x8x128xi32, #tpu.memory_space<vmem>>, vector<1x1x8x128xi32>
    %6 = vector.shape_cast %5 : vector<1x1x8x128xi32> to vector<1x8x128xi32>
    %cst = arith.constant dense<0xFF800000> : vector<8x128xf32>
    %7 = vector.multi_reduction <maximumf>, %4, %cst [0] : vector<4x8x128xf32> to vector<8x128xf32>
    %8 = vector.shape_cast %7 : vector<8x128xf32> to vector<1x8x128xf32>
    %9 = vector.broadcast %8 : vector<1x8x128xf32> to vector<4x8x128xf32>
    %10 = arith.subf %4, %9 : vector<4x8x128xf32>
    %11 = math.exp %10 : vector<4x8x128xf32>
    %cst_8 = arith.constant dense<0.000000e+00> : vector<8x128xf32>
    %12 = vector.multi_reduction <add>, %11, %cst_8 [0] : vector<4x8x128xf32> to vector<8x128xf32>
    %13 = vector.shape_cast %12 : vector<8x128xf32> to vector<1x8x128xf32>
    %14 = tpu.reciprocal %13 : vector<1x8x128xf32> -> vector<1x8x128xf32>
    %15 = vector.broadcast %14 : vector<1x8x128xf32> to vector<4x8x128xf32>
    %16 = arith.mulf %11, %15 : vector<4x8x128xf32>
    %c4_i32 = arith.constant 4 : i32
    %17 = vector.broadcast %c4_i32 : i32 to vector<1x8x128xi32>
    %18 = arith.cmpi slt, %6, %17 : vector<1x8x128xi32>
    %19 = arith.extui %18 : vector<1x8x128xi1> to vector<1x8x128xi32>
    %20 = arith.sitofp %19 : vector<1x8x128xi32> to vector<1x8x128xf32>
    %21 = vector.broadcast %20 : vector<1x8x128xf32> to vector<4x8x128xf32>
    %22 = arith.mulf %16, %21 : vector<4x8x128xf32>
    %23 = tpu.iota {dimensions = array<i32: 0>} : vector<4x1x128xi32>
    %24 = vector.broadcast %23 : vector<4x1x128xi32> to vector<4x8x128xi32>
    %25 = vector.broadcast %6 : vector<1x8x128xi32> to vector<4x8x128xi32>
    %26 = arith.cmpi eq, %24, %25 : vector<4x8x128xi32>
    %cst_9 = arith.constant 0.000000e+00 : f32
    %27 = vector.broadcast %cst_9 : f32 to vector<4x8x128xf32>
    %28 = arith.select %26, %22, %27 : vector<4x8x128xi1>, vector<4x8x128xf32>
    %cst_10 = arith.constant 1.000000e+00 : f32
    %29 = vector.broadcast %cst_10 : f32 to vector<4x8x128xf32>
    %30 = arith.select %26, %29, %22 : vector<4x8x128xi1>, vector<4x8x128xf32>
    %31 = vector.shape_cast %28 : vector<4x8x128xf32> to vector<4x1x8x128xf32>
    %cst_11 = arith.constant dense<0.000000e+00> : vector<4x8x128xf32>
    %32 = vector.multi_reduction <add>, %31, %cst_11 [1] : vector<4x1x8x128xf32> to vector<4x8x128xf32>
    %33 = vector.shape_cast %30 : vector<4x8x128xf32> to vector<4x1x8x128xf32>
    %cst_12 = arith.constant dense<0.000000e+00> : vector<4x8x128xf32>
    %34 = vector.multi_reduction <add>, %33, %cst_12 [1] : vector<4x1x8x128xf32> to vector<4x8x128xf32>
    %c0_13 = arith.constant 0 : index
    %c0_14 = arith.constant 0 : index
    %c0_15 = arith.constant 0 : index
    %c0_16 = arith.constant 0 : index
    %c0_17 = arith.constant 0 : index
    %35 = vector.load %arg5[%c0_13, %c0_14, %c0_15, %c0_16, %c0_17] : memref<1x1x4x8x128xf32, #tpu.memory_space<vmem>>, vector<1x1x4x8x128xf32>
    %36 = vector.shape_cast %35 : vector<1x1x4x8x128xf32> to vector<4x8x128xf32>
    %37 = arith.addf %36, %32 : vector<4x8x128xf32>
    %c0_18 = arith.constant 0 : index
    %c0_19 = arith.constant 0 : index
    %c0_20 = arith.constant 0 : index
    %c0_21 = arith.constant 0 : index
    %c0_22 = arith.constant 0 : index
    %38 = vector.load %arg5[%c0_18, %c0_19, %c0_20, %c0_21, %c0_22] : memref<1x1x4x8x128xf32, #tpu.memory_space<vmem>>, vector<1x1x4x8x128xf32>
    %39 = vector.shape_cast %38 : vector<1x1x4x8x128xf32> to vector<4x8x128xf32>
    %40 = vector.shape_cast %37 : vector<4x8x128xf32> to vector<1x1x4x8x128xf32>
    tpu.vector_store %arg5[%c0_18, %c0_19, %c0_20, %c0_21, %c0_22], %40 {strides = array<i32>} : memref<1x1x4x8x128xf32, #tpu.memory_space<vmem>>, vector<1x1x4x8x128xf32>,
    %c0_23 = arith.constant 0 : index
    %c0_24 = arith.constant 0 : index
    %c0_25 = arith.constant 0 : index
    %c0_26 = arith.constant 0 : index
    %c0_27 = arith.constant 0 : index
    %41 = vector.load %arg6[%c0_23, %c0_24, %c0_25, %c0_26, %c0_27] : memref<1x1x4x8x128xf32, #tpu.memory_space<vmem>>, vector<1x1x4x8x128xf32>
    %42 = vector.shape_cast %41 : vector<1x1x4x8x128xf32> to vector<4x8x128xf32>
    %43 = arith.addf %42, %34 : vector<4x8x128xf32>
    %c0_28 = arith.constant 0 : index
    %c0_29 = arith.constant 0 : index
    %c0_30 = arith.constant 0 : index
    %c0_31 = arith.constant 0 : index
    %c0_32 = arith.constant 0 : index
    %44 = vector.load %arg6[%c0_28, %c0_29, %c0_30, %c0_31, %c0_32] : memref<1x1x4x8x128xf32, #tpu.memory_space<vmem>>, vector<1x1x4x8x128xf32>
    %45 = vector.shape_cast %44 : vector<1x1x4x8x128xf32> to vector<4x8x128xf32>
    %46 = vector.shape_cast %43 : vector<4x8x128xf32> to vector<1x1x4x8x128xf32>
    tpu.vector_store %arg6[%c0_28, %c0_29, %c0_30, %c0_31, %c0_32], %46 {strides = array<i32>} : memref<1x1x4x8x128xf32, #tpu.memory_space<vmem>>, vector<1x1x4x8x128xf32>,
    return
  }
  func.func @transform_0(%arg0: i32, %arg1: i32, %arg2: i32) -> (i32, i32, i32, i32) {
    %c1_i32 = arith.constant 1 : i32
    %0 = arith.muli %arg1, %c1_i32 : i32
    %1 = arith.addi %0, %arg2 : i32
    %c0_i32 = arith.constant 0 : i32
    %c0_i32_0 = arith.constant 0 : i32
    %c0_i32_1 = arith.constant 0 : i32
    return %arg0, %c0_i32, %1, %c0_i32_0 : i32, i32, i32, i32
  }
  func.func @transform_1(%arg0: i32, %arg1: i32, %arg2: i32) -> (i32, i32, i32, i32) {
    %c1_i32 = arith.constant 1 : i32
    %0 = arith.muli %arg1, %c1_i32 : i32
    %1 = arith.addi %0, %arg2 : i32
    %c0_i32 = arith.constant 0 : i32
    %c0_i32_0 = arith.constant 0 : i32
    %c0_i32_1 = arith.constant 0 : i32
    return %arg0, %c0_i32, %1, %c0_i32_0 : i32, i32, i32, i32
  }
  func.func @transform_2(%arg0: i32, %arg1: i32, %arg2: i32) -> (i32, i32, i32, i32, i32) {
    %c0_i32 = arith.constant 0 : i32
    %c0_i32_0 = arith.constant 0 : i32
    %c0_i32_1 = arith.constant 0 : i32
    %c0_i32_2 = arith.constant 0 : i32
    return %arg0, %arg1, %c0_i32, %c0_i32_0, %c0_i32_1 : i32, i32, i32, i32, i32
  }
  func.func @transform_3(%arg0: i32, %arg1: i32, %arg2: i32) -> (i32, i32, i32, i32, i32) {
    %c0_i32 = arith.constant 0 : i32
    %c0_i32_0 = arith.constant 0 : i32
    %c0_i32_1 = arith.constant 0 : i32
    %c0_i32_2 = arith.constant 0 : i32
    return %arg0, %arg1, %c0_i32, %c0_i32_0, %c0_i32_1 : i32, i32, i32, i32, i32
  }
}

</mosaic_0001>

<bundles_post_ra>
// kernel: tpu_custom_call.1
= control target key start
LH: loop header
LB: loop body
LE: loop exit
PB: predicated region body
PF: predicated region fallthrough
CT: control target
= control target key end

     0   :  { %s1098_s0 = inlined_call_operand.hbm [shape: f32[2,4,8,128], index: 0, kind: input, shape index: {}]   ;;  %s1099_s1 = inlined_call_operand.hbm [shape: s32[2,1,8,128], index: 1, kind: input, shape index: {}]   ;;  %s1100_s2 = inlined_call_operand.hbm [shape: f32[2,1,4,8,128], index: 2, kind: output, shape index: {0}]   ;;  %s1101_s3 = inlined_call_operand.hbm [shape: f32[2,1,4,8,128], index: 3, kind: output, shape index: {1}]  }
   0x1   :  { %1102 = sst [smem:[#allocation14_spill]] %s1098_s0 }
   0x2   :  { %9 = vsyncpa [#allocation3], 0 }
   0x3   :  { %11 = vsyncpa [#allocation3 + $0x1], 0 }
   0x4   :  { %12 = vsyncpa [#allocation6], 0 }
   0x5   :  { %14 = vsyncpa [#allocation6 + $0x1], 0 }
   0x6   :  { %15 = vsyncpa [#allocation4], 0 }
   0x7   :  { %17 = vsyncpa [#allocation4 + $0x1], 0 }
   0x8   :  { %18 = vsyncpa [#allocation9], 0 }
   0x9   :  { %20 = vsyncpa [#allocation9 + $0x1], 0  ;;  %s868_s12 = smov 0   ;;  %s870_s13 = smov 0  }
   0xa   :  { %s872_s14 = smov 0   ;;  %s874_s15 = smov 0  }
   0xb   :  { %s876_s16 = smov 0   ;;  %s878_s17 = smov 0  }
   0xc LB: > { %s554_s18 = sadd.s32 4294967295, %s837_s17   ;;  %s555_s19 = sadd.s32 4294967294, %s837_s17   ;;  %s837_s17 = sphi %s878_s17, %s26_s17   ;;  %s833_s16 = sphi %s876_s16, %s1114_s16   ;;  %s829_s15 = sphi %s874_s15, %s1113_s15   ;;  %s825_s14 = sphi %s872_s14, %s1112_s14   ;;  %s821_s13 = sphi %s870_s13, %s1111_s13   ;;  %s817_s12 = sphi %s868_s12, %s1110_s12  }
   0xd   : > { %s45_s20 = sadd.s32 1, %s833_s16  ;;  %s56_s21 = sadd.s32 1, %s825_s14 }
   0xe   : > { %p47_p0 = scmp.ge.s32.totalorder %s45_s20, 2  ;;  %p63_p1 = scmp.ne.s32.totalorder %s825_s14, %s821_s13 }
   0xf   : > { %p64_p2 = scmp.eq.s32.totalorder %s837_s17, 0  ;;  %p69_p3 = scmp.ne.s32.totalorder %s821_s13, %s817_s12 }
  0x10   : > { %s1116_s20 = smov (%p47_p0, %s45_s20), 0  ;;  %p70_p5 = scmp.eq.s32.totalorder %s554_s18, 0 }
  0x11   : > { %p909_p4 = por %p64_p2, %p63_p1  ;;  %s51_s23 = ssub.s32 %s833_s16, %s1116_s20 }
  0x12   : > { %p125_p6 = scmp.eq.s32.totalorder %s554_s18, 1  ;;  %p54_p7 = scmp.eq.s32.totalorder %s51_s23, 0 }
  0x13   : > { %p915_p8 = por %p70_p5, %p69_p3  ;;  %p131_p10 = scmp.eq.s32.totalorder %s555_s19, 1 }
  0x14   : > { %p919_p9 = por %p125_p6, %p63_p1  ;;  %p557_p12 = scmp.ge.s32.totalorder %s837_s17, 2 }
  0x15   : > { %s924_s26 = scalar_select %p54_p7, %s825_s14, %s56_s21  }
  0x16   : > { %p926_p11 = por %p131_p10, %p69_p3  ;;  %p602_p13 = scmp.lt.s32.totalorder %s837_s17, 2 }
  0x17   : > { %s933_s28 = sand.u32 1, %s825_s14   ;;  %s577_s30 = sshll.u32 %s833_s16, 9 }
  0x18   : > { %s558_s29 = sshll.u32 %s933_s28, 5  ;;  %s1107_s0 = sld [smem:[#allocation14_spill]] }
  0x19   : > { %s183_s7 = scalar_lea.vmem [#allocation2], %s558_s29  ;;  %p942_p0 = pnand %p602_p13, %p909_p4 }
  0x1a   : > { %s192_s8 = sshll.u32 %s183_s7, 4  ;;  %p563_p1 = scmp.ge.s32.totalorder %s837_s17, 1  ;;  %s193_s8 = int_to_ptr.vmem [resolvable:$true] %s192_s8 }
  0x1b   : > { %s180_s10 = scalar_lea.sflag [#allocation3], %s933_s28  ;;  %p669_p2 = pneg %p942_p0 }
  0x1c   : > { %s680_s11 = scalar_lea.vmem %s193_s8, 512  ;;  %s839_s18 = smov [#allocation2]  }
  0x1d   : > { %p681_p3 = scmp.ne.s32.totalorder %s193_s8, %s680_s11  ;;  %s685_s19 = sshll.u32 %s839_s18, 4  ;;  %s686_s19 = int_to_ptr.vmem [resolvable:$false] %s685_s19 }
  0x1e   : > { %s191_s6 = scalar_lea.hbm %s1107_s0, %s577_s30  ;;  %s687_s21 = scalar_lea.vmem %s686_s19, 1024 }
  0x1f   : > { %p683_p5 = pnand %p681_p3, %p669_p2  ;;  %p688_p4 = scmp.lt.s32.totalorder %s193_s8, %s686_s19 }
  0x20   : > { %p689_p7 = scmp.lt.s32.totalorder %s687_s21, %s680_s11 }
  0x21   : > { %p684_p6 = pneg %p683_p5 }
  0x22   : > { %p690_p10 = por %p689_p7, %p688_p4 }
  0x24   : > { %p691_p13 = pnand %p690_p10, %p684_p6 }
  0x26   : > { %694 = shalt.err (!%p691_p13)
}
  0x27   : > { %s840_s22 = smov 128   ;;  %s841_s23 = smov 8  }
  0x28   : > { %591 = dma.hbm_to_vmem [thread:$0]  (!%p942_p0), %s191_s6, 512, %s193_s8, %s180_s10, %s840_s22, %s840_s22, %s841_s23  }
  0x29   : > { %p220_p3 = scmp.lt.s32.totalorder %s837_s17, 3  ;;  %s561_s29 = sshll.u32 %s933_s28, 3 }
  0x2a   : > { %s562_s30 = sshll.u32 %s833_s16, 7  ;;  %s206_s18 = scalar_lea.vmem [#allocation5], %s561_s29 }
  0x2b   : > { %p960_p5 = pnand %p563_p1, %p220_p3  ;;  %s213_s11 = scalar_lea.hbm %s1099_s1, %s562_s30 }
  0x2c   : > { %s215_s19 = sshll.u32 %s206_s18, 4  ;;  %s203_s21 = scalar_lea.sflag [#allocation6], %s933_s28  ;;  %s216_s19 = int_to_ptr.vmem [resolvable:$true] %s215_s19 }
  0x2d   : > { %s708_s0 = scalar_lea.vmem %s216_s19, 128  ;;  %s842_s6 = smov [#allocation5]  }
  0x2e   : > { %p709_p6 = scmp.ne.s32.totalorder %s216_s19, %s708_s0  ;;  %s713_s8 = sshll.u32 %s842_s6, 4  ;;  %s714_s8 = int_to_ptr.vmem [resolvable:$false] %s713_s8 }
  0x2f   : > { %s715_s10 = scalar_lea.vmem %s714_s8, 256  ;;  %p716_p1 = scmp.lt.s32.totalorder %s216_s19, %s714_s8 }
  0x30   : > { %p711_p4 = pnand %p709_p6, %p669_p2  ;;  %p717_p10 = scmp.lt.s32.totalorder %s715_s10, %s708_s0 }
  0x32   : > { %p712_p7 = pneg %p711_p4  ;;  %p718_p13 = por %p717_p10, %p716_p1 }
  0x34   : > { %p719_p3 = pnand %p718_p13, %p712_p7 }
  0x36   : > { %722 = shalt.err (!%p719_p3)
}
  0x37   : > { %594 = dma.hbm_to_vmem [thread:$0]  (!%p942_p0), %s213_s11, 128, %s216_s19, %s203_s21  }
  0x38   : > { %224 = sbr.rel (%p960_p5) target bundleno = 152 (0x98), region = 28  ;;  %s976_s28 = sand.u32 (!%p960_p5), 1, %s821_s13  }
  0x39   : > { %s979_s22 = sshll.u32 (!%p960_p5), %s976_s28, 5  ;;  %s227_s23 = scalar_lea.sflag (!%p960_p5), [#allocation3], %s976_s28 }
  0x3a   : > { %s230_s0 = scalar_lea.vmem (!%p960_p5), [#allocation2], %s979_s22 }
  0x3d   : > { %800 = dma.done.wait (%p915_p8), %s227_s23, 512  }
  0x3e   : > { %802 = vsyncadd (%p915_p8), %s227_s23, 4294966784  ;;  %s565_s9 = sshll.u32 %s976_s28, 3  ;;  %s236_s29 = scalar_lea.sflag [#allocation6], %s976_s28 }
  0x3f   : > { %s239_s30 = scalar_lea.vmem [#allocation5], %s565_s9 }
  0x40   : > { %804 = dma.done.wait (%p915_p8), %s236_s29, 128  }
  0x41   : > { %806 = vsyncadd (%p915_p8), %s236_s29, 4294967168  ;;  %v286_v0 = vld [vmem:[%s230_s0] sm:$0xff]  ;;  %v287_v1 = vld [vmem:[%s230_s0 + $0x8] sm:$0xff]  ;;  %v843_v24 = vmov 0.0   ;;  %s578_s24 = sshll.u32 %s829_s15, 9  ;;  %s264_s4 = scalar_lea.vmem [#allocation7], %s979_s22 }
  0x42   : > { %v288_v2 = vld [vmem:[%s230_s0 + $0x10] sm:$0xff]  ;;  %v289_v3 = vld [vmem:[%s230_s0 + $0x18] sm:$0xff]  ;;  %v291_v4 = vmax.f32 %v286_v0, %v287_v1  ;;  %v290_v22 = vld [vmem:[%s239_s30] sm:$0xff]  ;;  %s386_s5 = sshll.u32 %s264_s4, 4  ;;  %s998_s18 = scalar_lea.hbm %s1100_s2, %s578_s24  ;;  %s1004_s5 = int_to_ptr.vmem [resolvable:$true] %s386_s5 }
  0x43   : > { %v292_v5 = vmax.f32 %v288_v2, %v289_v3  ;;  %vm314_vm0 = vcmp.lt.s32.totalorder %v290_v22, 4  ;;  %vm321_vm1 = vcmp.eq.s32.totalorder %v290_v22, 0  ;;  %vm322_vm2 = vcmp.eq.s32.totalorder %v290_v22, 1  ;;  %s1007_s15 = scalar_lea.vmem [#allocation8], %s979_s22  ;;  %s1017_s8 = scalar_lea.hbm %s1101_s3, %s578_s24 }
  0x44   : > { %v568_v25 = vsel %vm314_vm0, 1.0, %v843_v24  ;;  %vm323_vm3 = vcmp.eq.s32.totalorder %v290_v22, 2  ;;  %vm324_vm4 = vcmp.eq.s32.totalorder %v290_v22, 3  ;;  %s404_s19 = sshll.u32 %s1007_s15, 4  ;;  %s366_s10 = scalar_lea.sflag [#allocation4], %s976_s28  ;;  %s1019_s19 = int_to_ptr.vmem [resolvable:$true] %s404_s19 }
  0x45   : > { %v293_v6 = vmax.f32 %v291_v4, %v292_v5  ;;  %s723_s22 = scalar_lea.vmem %s1004_s5, 512  ;;  %s844_s23 = smov [#allocation7]  }
  0x46   : > { %p724_p8 = scmp.ne.s32.totalorder %s1004_s5, %s723_s22  ;;  %s727_s0 = sshll.u32 %s844_s23, 4  ;;  %s728_s0 = int_to_ptr.vmem [resolvable:$false] %s727_s0 }
  0x47   : > { %v294_v7 = vsub.f32 %v286_v0, %v293_v6  ;;  %v295_v8 = vsub.f32 %v287_v1, %v293_v6  ;;  %v296_v9 = vsub.f32 %v288_v2, %v293_v6  ;;  %v297_v10 = vsub.f32 %v289_v3, %v293_v6  ;;  %s729_s9 = scalar_lea.vmem %s728_s0, 1024  ;;  %p730_p5 = scmp.lt.s32.totalorder %s1004_s5, %s728_s0 }
  0x48   : > { %p725_p0 = pnand %p724_p8, %p919_p9  ;;  %p731_p6 = scmp.lt.s32.totalorder %s729_s9, %s723_s22 }
  0x49   : > { %v298_v11 = vmul.f32 1.442695, %v294_v7  ;;  %v300_v12 = vmul.f32 1.442695, %v295_v8  ;;  %v302_v13 = vmul.f32 1.442695, %v296_v9 }
  0x4a   : > { %v304_v14 = vmul.f32 1.442695, %v297_v10  ;;  %p726_p2 = pneg %p725_p0  ;;  %p732_p4 = por %p731_p6, %p730_p5 }
  0x4b   : > { %657 = vpow2.f32 %v298_v11 }
  0x4c   : > { %659 = vpow2.f32 %v300_v12  ;;  %p733_p7 = pnand %p732_p4, %p726_p2 }
  0x4d   : > { %661 = vpow2.f32 %v302_v13 }
  0x4e   : > { %663 = vpow2.f32 %v304_v14 }
  0x58   : > { %v658_v15 = vpop.eup %657 }
  0x59   : > { %v660_v16 = vpop.eup %659 }
  0x5a   : > { %v662_v17 = vpop.eup %661  ;;  %v306_v18 = vadd.f32 %v660_v16, %v658_v15 }
  0x5b   : > { %v664_v19 = vpop.eup %663 }
  0x5c   : > { %v307_v20 = vadd.f32 %v662_v17, %v306_v18 }
  0x5e   : > { %v308_v21 = vadd.f32 %v664_v19, %v307_v20 }
  0x60   : > { %665 = vrcp.f32 %v308_v21 }
  0x6d   : > { %v666_v23 = vpop.eup %665 }
  0x6e   : > { %v310_v26 = vmul.f32 %v666_v23, %v658_v15  ;;  %v311_v27 = vmul.f32 %v666_v23, %v660_v16  ;;  %v312_v28 = vmul.f32 %v666_v23, %v662_v17  ;;  %v313_v29 = vmul.f32 %v666_v23, %v664_v19 }
  0x70   : > { %v317_v30 = vmul.f32 %v568_v25, %v310_v26  ;;  %v318_v31 = vmul.f32 %v568_v25, %v311_v27  ;;  %v319_v32 = vmul.f32 %v568_v25, %v312_v28  ;;  %v320_v33 = vmul.f32 %v568_v25, %v313_v29 }
  0x72   : > { %v325_v34 = vsel %vm321_vm1, %v317_v30, 0.0  ;;  %v326_v35 = vsel %vm322_vm2, %v318_v31, 0.0  ;;  %v327_v36 = vsel %vm323_vm3, %v319_v32, 0.0  ;;  %v328_v37 = vsel %vm324_vm4, %v320_v33, 0.0 }
  0x73   : > { %v329_v38 = vsel %vm321_vm1, 1.0, %v317_v30  ;;  %v330_v39 = vsel %vm322_vm2, 1.0, %v318_v31  ;;  %v331_v40 = vsel %vm323_vm3, 1.0, %v319_v32  ;;  %v332_v41 = vsel %vm324_vm4, 1.0, %v320_v33  ;;  %349 = vst [vmem:[%s264_s4] sm:$0xff] %v325_v34  ;;  %350 = vst [vmem:[%s264_s4 + $0x8] sm:$0xff] %v326_v35 }
  0x74   : > { %351 = vst [vmem:[%s264_s4 + $0x10] sm:$0xff] %v327_v36  ;;  %352 = vst [vmem:[%s264_s4 + $0x18] sm:$0xff] %v328_v37 }
  0x75   : > { %736 = shalt.err (!%p733_p7)
}
  0x76   : > { %s737_s29 = scalar_lea.hbm %s998_s18, 512  ;;  %s741_s4 = scalar_lea.hbm %s1100_s2, 1024 }
  0x77   : > { %p738_p1 = scmp.ne.s32.totalorder %s998_s18, %s737_s29  ;;  %p742_p3 = scmp.lt.s32.totalorder %s998_s18, %s1100_s2 }
  0x78   : > { %p743_p8 = scmp.lt.s32.totalorder %s741_s4, %s737_s29 }
  0x79   : > { %p739_p10 = pnand %p738_p1, %p919_p9 }
  0x7a   : > { %p744_p0 = por %p743_p8, %p742_p3 }
  0x7b   : > { %p740_p13 = pneg %p739_p10 }
  0x7d   : > { %p745_p2 = pnand %p744_p0, %p740_p13 }
  0x7f   : > { %748 = shalt.err (!%p745_p2)
}
  0x80   : > { %s845_s21 = smov 128   ;;  %s846_s6 = smov 8   ;;  %361 = vst [vmem:[%s1007_s15] sm:$0xff] %v329_v38  ;;  %362 = vst [vmem:[%s1007_s15 + $0x8] sm:$0xff] %v330_v39 }
  0x81   : > { %584 = dma.vmem_to_hbm [thread:$0]  (%p919_p9), %s1004_s5, 512, %s998_s18, %s366_s10, %s845_s21, %s845_s21, %s846_s6  }
  0x82   : > { %363 = vst [vmem:[%s1007_s15 + $0x10] sm:$0xff] %v331_v40  ;;  %364 = vst [vmem:[%s1007_s15 + $0x18] sm:$0xff] %v332_v41  ;;  %s371_s22 = scalar_lea.sflag [#allocation9], %s976_s28  ;;  %s749_s23 = scalar_lea.vmem %s1019_s19, 512 }
  0x83   : > { %p750_p5 = scmp.ne.s32.totalorder %s1019_s19, %s749_s23  ;;  %s847_s0 = smov [#allocation8]  }
  0x84   : > { %s753_s9 = sshll.u32 %s847_s0, 4  ;;  %s754_s9 = int_to_ptr.vmem [resolvable:$false] %s753_s9 }
  0x85   : > { %p751_p6 = pnand %p750_p5, %p919_p9  ;;  %s755_s29 = scalar_lea.vmem %s754_s9, 1024 }
  0x86   : > { %p756_p7 = scmp.lt.s32.totalorder %s1019_s19, %s754_s9  ;;  %p757_p1 = scmp.lt.s32.totalorder %s755_s29, %s749_s23 }
  0x87   : > { %p752_p4 = pneg %p751_p6 }
  0x88   : > { %p758_p10 = por %p757_p1, %p756_p7 }
  0x8a   : > { %p759_p13 = pnand %p758_p10, %p752_p4 }
  0x8c   : > { %762 = shalt.err (!%p759_p13)
}
  0x8d   : > { %s763_s5 = scalar_lea.hbm %s1017_s8, 512  ;;  %s767_s15 = scalar_lea.hbm %s1101_s3, 1024 }
  0x8e   : > { %p764_p3 = scmp.ne.s32.totalorder %s1017_s8, %s763_s5  ;;  %p768_p2 = scmp.lt.s32.totalorder %s1017_s8, %s1101_s3 }
  0x8f   : > { %p769_p5 = scmp.lt.s32.totalorder %s767_s15, %s763_s5 }
  0x90   : > { %p765_p8 = pnand %p764_p3, %p919_p9 }
  0x91   : > { %p770_p6 = por %p769_p5, %p768_p2 }
  0x92   : > { %p766_p0 = pneg %p765_p8 }
  0x94   : > { %p771_p4 = pnand %p770_p6, %p766_p0 }
  0x96   : > { %774 = shalt.err (!%p771_p4)
}
  0x97   : > { %585 = dma.vmem_to_hbm [thread:$0]  (%p919_p9), %s1019_s19, 512, %s1017_s8, %s371_s22, %s845_s21, %s845_s21, %s846_s6  }
  0x98 PF: > { %s419_s24 = sand.u32 1, %s817_s12   ;;  %p596_p7 = pnand %p557_p12, %p926_p11 }
  0x99   : > { %s420_s4 = scalar_lea.sflag [#allocation4], %s419_s24 }
  0x9a   : > { %p597_p1 = pneg %p596_p7 }
  0x9c   : > { %808 = dma.done.wait (%p597_p1), %s420_s4, 512  }
  0x9d   : > { %810 = vsyncadd (%p597_p1), %s420_s4, 4294966784  ;;  %s429_s7 = scalar_lea.sflag [#allocation9], %s419_s24 }
  0x9e   : > { %812 = dma.done.wait (%p597_p1), %s429_s7, 512  }
  0x9f   : > { %814 = vsyncadd (%p597_p1), %s429_s7, 4294966784  ;;  %s26_s17 = sadd.s32 1, %s837_s17   ;;  %s1110_s12 = smov %s821_s13 }
  0xa0   : > { %p23_p10 = scmp.ge.s32.totalorder %s26_s17, 4   ;;  %s1111_s13 = smov %s825_s14 }
  0xa1   : > { %s1112_s14 = smov %s924_s26  ;;  %s1113_s15 = smov %s833_s16 }
  0xa2   : > { %s1114_s16 = smov %s1116_s20  ;;  %25 = sbr.rel (!%p23_p10) target bundleno = 12 (0xc), region = 107 }
  0xa7   :  { %434 = vsyncpa [#allocation3], 1 }
  0xa8   :  { %436 = vsyncpa [#allocation3 + $0x1], 1 }
  0xa9   :  { %437 = vsyncpa [#allocation6], 1 }
  0xaa   :  { %439 = vsyncpa [#allocation6 + $0x1], 1 }
  0xab   :  { %440 = vsyncpa [#allocation4], 1 }
  0xac   :  { %442 = vsyncpa [#allocation4 + $0x1], 1 }
  0xad   :  { %443 = vsyncpa [#allocation9], 1 }
  0xae   :  { %445 = vsyncpa [#allocation9 + $0x1], 1 }

</bundles_post_ra>
